<compile_context>
chip_gen: v6e
topology: v6e:2x2x1
jax: 0.10.0
libtpu: 0.0.40
codegen_flags: <defaults>
</compile_context>

<pallas_src>
import jax
import jax.numpy as jnp
from jax.experimental import pallas as pl
from jax.experimental.pallas import tpu as pltpu


def _selector_kernel(code_ref, wm_ref, w1a_ref, w1b_ref, bn_scale_ref, bias1_ref,
                     w2_ref, b2_ref, out_ref):
    # Activations arrive as f32 straight from HBM; cast to bf16 in VMEM for the MXU.
    code = code_ref[...].astype(jnp.bfloat16)
    wm = wm_ref[...].astype(jnp.bfloat16)

    # fc: concat realized as two matmuls, single accumulating expression (f32 acc).
    x = (jnp.dot(code, w1a_ref[...], preferred_element_type=jnp.float32)
         + jnp.dot(wm, w1b_ref[...], preferred_element_type=jnp.float32))

    # Eval-mode BatchNorm: f32 scale/shift epilogue (bias1 already folds fc bias).
    x = x * bn_scale_ref[...] + bias1_ref[...]

    # ReLU (VPU, f32).
    x = jnp.maximum(x, 0.0)

    # Dropout is identity in eval mode.
    # TODO(synk): training-mode dropout (pltpu.prng_random_bits mask) not emitted here.

    # selector: x @ W2' + b2'  (W2'/b2' lane-padded to 128 -> unmasked full-width store)
    out = jnp.dot(x.astype(jnp.bfloat16), w2_ref[...],
                  preferred_element_type=jnp.float32) + b2_ref[...]
    out_ref[...] = out.astype(out_ref.dtype)


def _round_up(x, m):
    return ((x + m - 1) // m) * m


def _choose_tile(B):
    """Batch tile: 512 for large B, split into >=2 tiles for mid-size B (v7x two
    TensorCores), minimal 8-aligned tile for small B (f32 sublane = 8)."""
    TB_MAX = 512
    if B >= TB_MAX:
        return TB_MAX
    if B > 16:
        return _round_up(pl.cdiv(B, 2), 8)
    return _round_up(max(B, 8), 8)


def selector_forward(code_feature, wm_feature, params):
    """code_feature, wm_feature: [B, D] float32. Returns [B, num_warpers] float32."""
    B, D = code_feature.shape
    w1a = params["w1a"]            # [D, D]    bf16 (fc weight half 1, transposed, unscaled)
    w1b = params["w1b"]            # [D, D]    bf16 (fc weight half 2, transposed, unscaled)
    bn_scale = params["bn_scale"]  # [1, D]    f32  (gamma / sqrt(var + eps))
    bias1 = params["bias1"]        # [1, D]    f32  (b1 * bn_scale + bn_bias)
    w2 = params["w2"]              # [D, NWP]  bf16 (selector weight, transposed, lane-padded)
    b2 = params["b2"]              # [1, NWP]  f32  (selector bias, lane-padded)
    Nw = int(params["num_warpers"])
    NWP = w2.shape[1]

    TB = _choose_tile(B)
    B_pad = _round_up(B, TB)

    # Feed the original f32 activations (no bf16 copy round-trip); pad only if needed.
    code = code_feature
    wm = wm_feature
    if B_pad != B:
        pad = ((0, B_pad - B), (0, 0))
        code = jnp.pad(code, pad)
        wm = jnp.pad(wm, pad)

    out = pl.pallas_call(
        _selector_kernel,
        out_shape=jax.ShapeDtypeStruct((B_pad, NWP), jnp.float32),
        grid=(B_pad // TB,),
        in_specs=[
            pl.BlockSpec((TB, D), lambda i: (i, 0)),    # code tile (pipelined, f32)
            pl.BlockSpec((TB, D), lambda i: (i, 0)),    # wm tile   (pipelined, f32)
            pl.BlockSpec((D, D), lambda i: (0, 0)),     # w1a (resident)
            pl.BlockSpec((D, D), lambda i: (0, 0)),     # w1b (resident)
            pl.BlockSpec((1, D), lambda i: (0, 0)),     # bn scale (resident)
            pl.BlockSpec((1, D), lambda i: (0, 0)),     # folded bias (resident)
            pl.BlockSpec((D, NWP), lambda i: (0, 0)),   # w2 (resident)
            pl.BlockSpec((1, NWP), lambda i: (0, 0)),   # b2 (resident)
        ],
        out_specs=pl.BlockSpec((TB, NWP), lambda i: (i, 0)),
        compiler_params=pltpu.CompilerParams(
            dimension_semantics=("parallel",),
        ),
    )(code, wm, w1a, w1b, bn_scale, bias1, w2, b2)
    return out[:B, :Nw]


def make_params(key, input_dim, num_warpers, eps=1e-5):
    """Deterministic synthetic parameters matching the PyTorch module's shapes.
    Eval-mode BatchNorm is applied as an f32 scale/shift in the kernel epilogue
    (weights stay bf16 unscaled); fc bias + BN shift are folded into one f32 bias."""
    ks = jax.random.split(key, 8)
    D, Nw = input_dim, num_warpers
    # fc: Linear(2D -> D): weight [D, 2D], bias [D]
    w1 = jax.random.normal(ks[0], (D, 2 * D), jnp.float32) * 0.02
    b1 = jax.random.normal(ks[1], (D,), jnp.float32) * 0.02
    # BatchNorm1d(D): gamma, beta, running_mean, running_var
    gamma = 1.0 + 0.1 * jax.random.normal(ks[2], (D,), jnp.float32)
    beta = 0.1 * jax.random.normal(ks[3], (D,), jnp.float32)
    running_mean = 0.1 * jax.random.normal(ks[4], (D,), jnp.float32)
    running_var = 1.0 + 0.1 * jax.random.uniform(ks[5], (D,), jnp.float32)
    # selector: Linear(D -> Nw)
    w2 = jax.random.normal(ks[6], (Nw, D), jnp.float32) * 0.02
    b2 = jax.random.normal(ks[7], (Nw,), jnp.float32) * 0.02

    bn_scale = gamma / jnp.sqrt(running_var + eps)
    bn_bias = beta - running_mean * bn_scale
    # fc weight halves, transposed for [B,D] @ [D,D], kept UNSCALED in bf16.
    w1a_t = jnp.transpose(w1[:, :D])                         # [D, D]
    w1b_t = jnp.transpose(w1[:, D:])                         # [D, D]
    bias1 = (b1 * bn_scale + bn_bias).reshape(1, D)          # [1, D] f32

    # Lane-pad the selector weight/bias to a multiple of 128 for full-width stores.
    NWP = max(128, _round_up(Nw, 128))
    w2_t = jnp.transpose(w2)                                 # [D, Nw]
    w2_pad = jnp.zeros((D, NWP), jnp.float32).at[:, :Nw].set(w2_t)
    b2_pad = jnp.zeros((1, NWP), jnp.float32).at[:, :Nw].set(b2[None, :])

    return {
        "w1a": w1a_t.astype(jnp.bfloat16),
        "w1b": w1b_t.astype(jnp.bfloat16),
        "bn_scale": bn_scale.reshape(1, D),
        "bias1": bias1,
        "w2": w2_pad.astype(jnp.bfloat16),
        "b2": b2_pad,
        "num_warpers": int(Nw),
        # full-precision originals for the pure-JAX reference
        "ref": {"w1": w1, "b1": b1, "bn_scale": bn_scale, "bn_bias": bn_bias,
                "w2": w2, "b2": b2},
    }


def _reference(code, wm, ref):
    x = jnp.concatenate([code, wm], axis=1) @ ref["w1"].T + ref["b1"]
    x = x * ref["bn_scale"] + ref["bn_bias"]
    x = jnp.maximum(x, 0.0)
    return x @ ref["w2"].T + ref["b2"]


if __name__ == "__main__":
    B, D, NUM_WARPERS = 8, 128, 16
    key = jax.random.PRNGKey(0)
    k_code, k_wm, k_params = jax.random.split(key, 3)

    code_feature = jax.random.normal(k_code, (B, D), jnp.float32)
    wm_feature = jax.random.normal(k_wm, (B, D), jnp.float32)
    params = make_params(k_params, D, NUM_WARPERS)

    out = selector_forward(code_feature, wm_feature, params)
    out = jax.block_until_ready(out)

    ref = _reference(code_feature, wm_feature, params["ref"])
    assert out.shape == (B, NUM_WARPERS)
    # bf16 matmul inputs with f32 accumulation: relaxed tolerance vs. f32 reference.
    assert jnp.allclose(out, ref, atol=3e-2, rtol=3e-2), "mismatch vs. pure-JAX reference"
    print("KERNEL_OK")
</pallas_src>

<mosaic_0001>
module attributes {stable_mosaic.version = 11 : i64} {
  func.func @_selector_kernel(%arg0: i32, %arg1: memref<8x128xf32, #tpu.memory_space<vmem>>, %arg2: memref<8x128xf32, #tpu.memory_space<vmem>>, %arg3: memref<128x128xbf16, #tpu.memory_space<vmem>>, %arg4: memref<128x128xbf16, #tpu.memory_space<vmem>>, %arg5: memref<1x128xf32, #tpu.memory_space<vmem>>, %arg6: memref<1x128xf32, #tpu.memory_space<vmem>>, %arg7: memref<128x128xbf16, #tpu.memory_space<vmem>>, %arg8: memref<1x128xf32, #tpu.memory_space<vmem>>, %arg9: memref<8x128xf32, #tpu.memory_space<vmem>>) attributes {dimension_semantics = [#tpu.dimension_semantics<parallel>], iteration_bounds = array<i64: 1>, scalar_prefetch = 0 : i64, scratch_operands = 0 : i64, tpu.core_type = #tpu.core_type<tc>, window_params = [{transform_indices = @transform_0, window_bounds = array<i64: 8, 128>}, {transform_indices = @transform_1, window_bounds = array<i64: 8, 128>}, {pipeline_mode = #tpu.pipeline_mode<synchronous>, transform_indices = @transform_2, window_bounds = array<i64: 128, 128>}, {pipeline_mode = #tpu.pipeline_mode<synchronous>, transform_indices = @transform_3, window_bounds = array<i64: 128, 128>}, {pipeline_mode = #tpu.pipeline_mode<synchronous>, transform_indices = @transform_4, window_bounds = array<i64: 1, 128>}, {pipeline_mode = #tpu.pipeline_mode<synchronous>, transform_indices = @transform_5, window_bounds = array<i64: 1, 128>}, {pipeline_mode = #tpu.pipeline_mode<synchronous>, transform_indices = @transform_6, window_bounds = array<i64: 128, 128>}, {pipeline_mode = #tpu.pipeline_mode<synchronous>, transform_indices = @transform_7, window_bounds = array<i64: 1, 128>}, {transform_indices = @transform_8, window_bounds = array<i64: 8, 128>}]} {
    %c0 = arith.constant 0 : index
    %c0_0 = arith.constant 0 : index
    %0 = vector.load %arg1[%c0, %c0_0] : memref<8x128xf32, #tpu.memory_space<vmem>>, vector<8x128xf32>
    %1 = arith.truncf %0 : vector<8x128xf32> to vector<8x128xbf16>
    %c0_1 = arith.constant 0 : index
    %c0_2 = arith.constant 0 : index
    %2 = vector.load %arg2[%c0_1, %c0_2] : memref<8x128xf32, #tpu.memory_space<vmem>>, vector<8x128xf32>
    %3 = arith.truncf %2 : vector<8x128xf32> to vector<8x128xbf16>
    %c0_3 = arith.constant 0 : index
    %c0_4 = arith.constant 0 : index
    %4 = vector.load %arg3[%c0_3, %c0_4] : memref<128x128xbf16, #tpu.memory_space<vmem>>, vector<128x128xbf16>
    %cst = arith.constant dense<0.000000e+00> : vector<8x128xf32>
    %5 = tpu.matmul %1, %4, %cst {dimension_numbers = #tpu.dot_dimension_numbers<[1], [0], [0], [1], [0, 0, 1, 1], [], []>} : vector<8x128xbf16>, vector<128x128xbf16>, vector<8x128xf32> -> vector<8x128xf32>
    %c0_5 = arith.constant 0 : index
    %c0_6 = arith.constant 0 : index
    %6 = vector.load %arg4[%c0_5, %c0_6] : memref<128x128xbf16, #tpu.memory_space<vmem>>, vector<128x128xbf16>
    %cst_7 = arith.constant dense<0.000000e+00> : vector<8x128xf32>
    %7 = tpu.matmul %3, %6, %cst_7 {dimension_numbers = #tpu.dot_dimension_numbers<[1], [0], [0], [1], [0, 0, 1, 1], [], []>} : vector<8x128xbf16>, vector<128x128xbf16>, vector<8x128xf32> -> vector<8x128xf32>
    %8 = arith.addf %5, %7 : vector<8x128xf32>
    %c0_8 = arith.constant 0 : index
    %c0_9 = arith.constant 0 : index
    %9 = vector.load %arg5[%c0_8, %c0_9] : memref<1x128xf32, #tpu.memory_space<vmem>>, vector<1x128xf32>
    %10 = vector.broadcast %9 : vector<1x128xf32> to vector<8x128xf32>
    %11 = arith.mulf %8, %10 : vector<8x128xf32>
    %c0_10 = arith.constant 0 : index
    %c0_11 = arith.constant 0 : index
    %12 = vector.load %arg6[%c0_10, %c0_11] : memref<1x128xf32, #tpu.memory_space<vmem>>, vector<1x128xf32>
    %13 = vector.broadcast %12 : vector<1x128xf32> to vector<8x128xf32>
    %14 = arith.addf %11, %13 : vector<8x128xf32>
    %cst_12 = arith.constant 0.000000e+00 : f32
    %15 = vector.broadcast %cst_12 : f32 to vector<8x128xf32>
    %16 = arith.maximumf %14, %15 : vector<8x128xf32>
    %17 = arith.truncf %16 : vector<8x128xf32> to vector<8x128xbf16>
    %c0_13 = arith.constant 0 : index
    %c0_14 = arith.constant 0 : index
    %18 = vector.load %arg7[%c0_13, %c0_14] : memref<128x128xbf16, #tpu.memory_space<vmem>>, vector<128x128xbf16>
    %cst_15 = arith.constant dense<0.000000e+00> : vector<8x128xf32>
    %19 = tpu.matmul %17, %18, %cst_15 {dimension_numbers = #tpu.dot_dimension_numbers<[1], [0], [0], [1], [0, 0, 1, 1], [], []>} : vector<8x128xbf16>, vector<128x128xbf16>, vector<8x128xf32> -> vector<8x128xf32>
    %c0_16 = arith.constant 0 : index
    %c0_17 = arith.constant 0 : index
    %20 = vector.load %arg8[%c0_16, %c0_17] : memref<1x128xf32, #tpu.memory_space<vmem>>, vector<1x128xf32>
    %21 = vector.broadcast %20 : vector<1x128xf32> to vector<8x128xf32>
    %22 = arith.addf %19, %21 : vector<8x128xf32>
    %c0_18 = arith.constant 0 : index
    %c0_19 = arith.constant 0 : index
    %23 = vector.load %arg9[%c0_18, %c0_19] : memref<8x128xf32, #tpu.memory_space<vmem>>, vector<8x128xf32>
    tpu.vector_store %arg9[%c0_18, %c0_19], %22 {strides = array<i32>} : memref<8x128xf32, #tpu.memory_space<vmem>>, vector<8x128xf32>,
    return
  }
  func.func @transform_0(%arg0: i32) -> (i32, i32) {
    %c0_i32 = arith.constant 0 : i32
    %c0_i32_0 = arith.constant 0 : i32
    return %arg0, %c0_i32 : i32, i32
  }
  func.func @transform_1(%arg0: i32) -> (i32, i32) {
    %c0_i32 = arith.constant 0 : i32
    %c0_i32_0 = arith.constant 0 : i32
    return %arg0, %c0_i32 : i32, i32
  }
  func.func @transform_2(%arg0: i32) -> (i32, i32) {
    %c0_i32 = arith.constant 0 : i32
    %c0_i32_0 = arith.constant 0 : i32
    %c0_i32_1 = arith.constant 0 : i32
    return %c0_i32, %c0_i32_0 : i32, i32
  }
  func.func @transform_3(%arg0: i32) -> (i32, i32) {
    %c0_i32 = arith.constant 0 : i32
    %c0_i32_0 = arith.constant 0 : i32
    %c0_i32_1 = arith.constant 0 : i32
    return %c0_i32, %c0_i32_0 : i32, i32
  }
  func.func @transform_4(%arg0: i32) -> (i32, i32) {
    %c0_i32 = arith.constant 0 : i32
    %c0_i32_0 = arith.constant 0 : i32
    %c0_i32_1 = arith.constant 0 : i32
    return %c0_i32, %c0_i32_0 : i32, i32
  }
  func.func @transform_5(%arg0: i32) -> (i32, i32) {
    %c0_i32 = arith.constant 0 : i32
    %c0_i32_0 = arith.constant 0 : i32
    %c0_i32_1 = arith.constant 0 : i32
    return %c0_i32, %c0_i32_0 : i32, i32
  }
  func.func @transform_6(%arg0: i32) -> (i32, i32) {
    %c0_i32 = arith.constant 0 : i32
    %c0_i32_0 = arith.constant 0 : i32
    %c0_i32_1 = arith.constant 0 : i32
    return %c0_i32, %c0_i32_0 : i32, i32
  }
  func.func @transform_7(%arg0: i32) -> (i32, i32) {
    %c0_i32 = arith.constant 0 : i32
    %c0_i32_0 = arith.constant 0 : i32
    %c0_i32_1 = arith.constant 0 : i32
    return %c0_i32, %c0_i32_0 : i32, i32
  }
  func.func @transform_8(%arg0: i32) -> (i32, i32) {
    %c0_i32 = arith.constant 0 : i32
    %c0_i32_0 = arith.constant 0 : i32
    return %arg0, %c0_i32 : i32, i32
  }
}

</mosaic_0001>

<bundles_post_ra>
// kernel: tpu_custom_call.1
= control target key start
LH: loop header
LB: loop body
LE: loop exit
PB: predicated region body
PF: predicated region fallthrough
CT: control target
= control target key end

     0   :  { %13 = vsyncpa [#allocation3], 0  ;;  %s851_s0 = inlined_call_operand.hbm [shape: f32[8,128], index: 0, kind: input, shape index: {}]   ;;  %s852_s1 = inlined_call_operand.hbm [shape: f32[8,128], index: 1, kind: input, shape index: {}]   ;;  %s853_s2 = inlined_call_operand.hbm [shape: bf16[128,128], index: 2, kind: input, shape index: {}]   ;;  %s854_s3 = inlined_call_operand.hbm [shape: bf16[128,128], index: 3, kind: input, shape index: {}]   ;;  %s855_s4 = inlined_call_operand.vmem [shape: f32[1,128], index: 4, kind: input, shape index: {}]   ;;  %s856_s5 = inlined_call_operand.vmem [shape: f32[1,128], index: 5, kind: input, shape index: {}]   ;;  %s857_s6 = inlined_call_operand.hbm [shape: bf16[128,128], index: 6, kind: input, shape index: {}]   ;;  %s858_s7 = inlined_call_operand.vmem [shape: f32[1,128], index: 7, kind: input, shape index: {}]   ;;  %s859_s8 = inlined_call_operand.hbm [shape: f32[8,128], index: 8, kind: output, shape index: {}]  }
   0x1   :  { %14 = vsyncpa [#allocation6], 0 }
   0x2   :  { %15 = vsyncpa [#allocation9], 0 }
   0x3   :  { %16 = vsyncpa [#allocation4], 0  ;;  %s730_s27 = smov [#allocation5]  }
   0x4   :  { %s33_s28 = sshll.u32 %s730_s27, 4  ;;  %s34_s28 = int_to_ptr.vmem [resolvable:$true] %s33_s28 }
   0x5   :  { %s610_s29 = scalar_lea.vmem %s34_s28, 128  ;;  %p615_p1 = scmp.lt.s32.totalorder %s34_s28, %s34_s28 }
   0x6   :  { %p611_p0 = scmp.ne.s32.totalorder %s34_s28, %s610_s29  ;;  %p616_p2 = scmp.lt.s32.totalorder %s610_s29, %s610_s29 }
   0x8   :  { %p617_p3 = por %p616_p2, %p615_p1 }
   0xa   :  { %p618_p4 = pnand %p617_p3, %p611_p0 }
   0xc   :  { %621 = shalt.err (!%p618_p4)
}
   0xd   :  { %36 = dma.hbm_to_vmem [thread:$0]  %s852_s1, 128, %s34_s28, [#allocation6]  }
   0xe   :  { %s731_s10 = smov [#allocation8]   ;;  %s732_s12 = smov [#allocation2]  }
   0xf   :  { %s54_s11 = sshll.u32 %s731_s10, 4  ;;  %s23_s13 = sshll.u32 %s732_s12, 4  ;;  %s55_s11 = int_to_ptr.vmem [resolvable:$true] %s54_s11  ;;  %s24_s13 = int_to_ptr.vmem [resolvable:$true] %s23_s13 }
  0x10   :  { %s630_s14 = scalar_lea.vmem %s55_s11, 1024  ;;  %p635_p6 = scmp.lt.s32.totalorder %s55_s11, %s55_s11 }
  0x11   :  { %p631_p5 = scmp.ne.s32.totalorder %s55_s11, %s630_s14  ;;  %p636_p7 = scmp.lt.s32.totalorder %s630_s14, %s630_s14 }
  0x13   :  { %p637_p8 = por %p636_p7, %p635_p6 }
  0x15   :  { %p638_p9 = pnand %p637_p8, %p631_p5 }
  0x17   :  { %641 = shalt.err (!%p638_p9)
}
  0x18   :  { %s733_s15 = smov 64   ;;  %s734_s16 = smov 4  }
  0x19   :  { %60 = dma.hbm_to_vmem [thread:$0]  %s854_s3, 1024, %s55_s11, [#allocation9], %s733_s15, %s733_s15, %s734_s16  }
  0x1a   :  { %s650_s1 = scalar_lea.vmem %s24_s13, 128  ;;  %p655_p11 = scmp.lt.s32.totalorder %s24_s13, %s24_s13 }
  0x1b   :  { %p651_p10 = scmp.ne.s32.totalorder %s24_s13, %s650_s1  ;;  %p656_p12 = scmp.lt.s32.totalorder %s650_s1, %s650_s1 }
  0x1d   :  { %p657_p13 = por %p656_p12, %p655_p11 }
  0x1f   :  { %p658_p0 = pnand %p657_p13, %p651_p10 }
  0x21   :  { %661 = shalt.err (!%p658_p0)
}
  0x22   :  { %26 = dma.hbm_to_vmem [thread:$0]  %s851_s0, 128, %s24_s13, [#allocation3]  }
  0x23   :  { %s735_s21 = smov [#allocation7]   ;;  %s736_s23 = smov [#allocation10]  }
  0x24   :  { %s42_s22 = sshll.u32 %s735_s21, 4  ;;  %s70_s24 = sshll.u32 %s736_s23, 4  ;;  %s43_s22 = int_to_ptr.vmem [resolvable:$true] %s42_s22  ;;  %s71_s24 = int_to_ptr.vmem [resolvable:$true] %s70_s24 }
  0x25   :  { %s670_s25 = scalar_lea.vmem %s43_s22, 1024  ;;  %p675_p2 = scmp.lt.s32.totalorder %s43_s22, %s43_s22 }
  0x26   :  { %p671_p1 = scmp.ne.s32.totalorder %s43_s22, %s670_s25  ;;  %p676_p3 = scmp.lt.s32.totalorder %s670_s25, %s670_s25 }
  0x28   :  { %p677_p4 = por %p676_p3, %p675_p2 }
  0x2a   :  { %p678_p5 = pnand %p677_p4, %p671_p1 }
  0x2c   :  { %681 = shalt.err (!%p678_p5)
}
  0x2d   :  { %48 = dma.hbm_to_vmem [thread:$0]  %s853_s2, 1024, %s43_s22, [#allocation6], %s733_s15, %s733_s15, %s734_s16  }
  0x2e   :  { %s690_s0 = scalar_lea.vmem %s71_s24, 1024  ;;  %p695_p7 = scmp.lt.s32.totalorder %s71_s24, %s71_s24 }
  0x2f   :  { %p691_p6 = scmp.ne.s32.totalorder %s71_s24, %s690_s0  ;;  %p696_p8 = scmp.lt.s32.totalorder %s690_s0, %s690_s0 }
  0x31   :  { %p697_p9 = por %p696_p8, %p695_p7 }
  0x33   :  { %p698_p10 = pnand %p697_p9, %p691_p6 }
  0x35   :  { %701 = shalt.err (!%p698_p10)
}
  0x36   :  { %76 = dma.hbm_to_vmem [thread:$0]  %s857_s6, 1024, %s71_s24, [#allocation9], %s733_s15, %s733_s15, %s734_s16  }
  0x37   :  { %722 = dma.done.wait [#allocation3], 128  }
  0x38   :  { %723 = vsyncadd [#allocation3], 4294967168 }
  0x39   :  { %724 = dma.done.wait [#allocation6], 1152  }
  0x3a   :  { %725 = vsyncadd [#allocation6], 4294966144 }
  0x3b   :  { %726 = dma.done.wait [#allocation9], 2048  }
  0x3c   :  { %727 = vsyncadd [#allocation9], 4294965248  ;;  %v737_v0 = vmov 0.0   ;;  %vm738_vm0 = vmmov 0   ;;  %v578_v1 = vld [vmem:[#allocation8 + $0x38] sm:$0xff]   ;;  %v580_v3 = vld [vmem:[#allocation8 + $0x30] sm:$0xff]  }
  0x3d   :  { %508 = vmatprep.subr.bf16.mxu0 %v737_v0  ;;  %528 = vmatprep.subr.bf16.mxu1 %v737_v0  ;;  %v579_v2 = vld [vmem:[#allocation7 + $0x38] sm:$0xff]   ;;  %v581_v4 = vld [vmem:[#allocation7 + $0x30] sm:$0xff]   ;;  %v582_v5 = vld [vmem:[#allocation8 + $0x28] sm:$0xff]  }
  0x3e   :  { %524 = vmatprep.mubr.msk.bf16.mxu0 %vm738_vm0, %v737_v0  ;;  %544 = vmatprep.mubr.msk.bf16.mxu1 %vm738_vm0, %v737_v0  ;;  %v583_v6 = vld [vmem:[#allocation7 + $0x28] sm:$0xff]   ;;  %v584_v7 = vld [vmem:[#allocation8 + $0x20] sm:$0xff]   ;;  %v586_v9 = vld [vmem:[#allocation8 + $0x18] sm:$0xff]  }
  0x3f   :  { %509 = vmatpush3.bf16.msra.mxu0 %v578_v1  ;;  %529 = vmatpush3.bf16.msra.mxu1 %v579_v2  ;;  %v585_v8 = vld [vmem:[#allocation7 + $0x20] sm:$0xff]   ;;  %v587_v10 = vld [vmem:[#allocation7 + $0x18] sm:$0xff]   ;;  %v588_v11 = vld [vmem:[#allocation8 + $0x10] sm:$0xff]  }
  0x40   :  { %510 = vmatprep.subr.bf16.mxu0 %v737_v0  ;;  %530 = vmatprep.subr.bf16.mxu1 %v737_v0  ;;  %v589_v12 = vld [vmem:[#allocation7 + $0x10] sm:$0xff]   ;;  %v590_v13 = vld [vmem:[#allocation8 + $0x8] sm:$0xff]   ;;  %v592_v15 = vld [vmem:[#allocation8] sm:$0xff]  }
  0x41   :  { %v591_v14 = vld [vmem:[#allocation7 + $0x8] sm:$0xff]   ;;  %v97_v16 = vld [vmem:[#allocation5] sm:$0xff]  ;;  %v593_v17 = vld [vmem:[#allocation7] sm:$0xff]  }
  0x42   :  { %v95_v18 = vld [vmem:[#allocation2] sm:$0xff]  ;;  %v98_v19 = vpack.c.bf16 %v97_v16, %v97_v16  ;;  %v594_v21 = vld [vmem:[#allocation10 + $0x38] sm:$0xff]   ;;  %v596_v23 = vld [vmem:[#allocation10 + $0x28] sm:$0xff]  }
  0x43   :  { %511 = vmatpush3.bf16.msra.mxu0 %v580_v3  ;;  %531 = vmatpush3.bf16.msra.mxu1 %v581_v4  ;;  %v96_v20 = vpack.c.bf16 %v95_v18, %v95_v18  ;;  %v595_v22 = vld [vmem:[#allocation10 + $0x30] sm:$0xff]   ;;  %v597_v24 = vld [vmem:[#allocation10 + $0x20] sm:$0xff]   ;;  %v598_v25 = vld [vmem:[#allocation10 + $0x18] sm:$0xff]  }
  0x44   :  { %512 = vmatprep.subr.bf16.mxu0 %v737_v0  ;;  %532 = vmatprep.subr.bf16.mxu1 %v737_v0  ;;  %v599_v26 = vld [vmem:[#allocation10 + $0x10] sm:$0xff]   ;;  %v600_v27 = vld [vmem:[#allocation10 + $0x8] sm:$0xff]   ;;  %v601_v28 = vld [vmem:[#allocation10] sm:$0xff]  }
  0x45   :  { %v470_v31 = vld [vmem:[%s855_s4] ss:$0 sm:$0xff]  ;;  %s739_s4 = smov [#allocation11]  }
  0x46   :  { %v471_v34 = vld [vmem:[%s856_s5] ss:$0 sm:$0xff]  ;;  %s443_s11 = sshll.u32 %s739_s4, 4  ;;  %s444_s11 = int_to_ptr.vmem [resolvable:$true] %s443_s11 }
  0x47   :  { %513 = vmatpush3.bf16.msra.mxu0 %v582_v5  ;;  %533 = vmatpush3.bf16.msra.mxu1 %v583_v6  ;;  %v472_v44 = vld [vmem:[%s858_s7] ss:$0 sm:$0xff]  ;;  %s702_s5 = scalar_lea.vmem %s444_s11, 128  ;;  %p707_p12 = scmp.lt.s32.totalorder %s444_s11, %s444_s11 }
  0x48   :  { %514 = vmatprep.subr.bf16.mxu0 %v737_v0  ;;  %534 = vmatprep.subr.bf16.mxu1 %v737_v0  ;;  %p703_p11 = scmp.ne.s32.totalorder %s444_s11, %s702_s5  ;;  %p708_p13 = scmp.lt.s32.totalorder %s702_s5, %s702_s5 }
  0x4a   :  { %p709_p0 = por %p708_p13, %p707_p12 }
  0x4b   :  { %515 = vmatpush3.bf16.msra.mxu0 %v584_v7  ;;  %535 = vmatpush3.bf16.msra.mxu1 %v585_v8 }
  0x4c   :  { %516 = vmatprep.subr.bf16.mxu0 %v737_v0  ;;  %536 = vmatprep.subr.bf16.mxu1 %v737_v0  ;;  %p710_p1 = pnand %p709_p0, %p703_p11 }
  0x4f   :  { %517 = vmatpush3.bf16.msra.mxu0 %v586_v9  ;;  %537 = vmatpush3.bf16.msra.mxu1 %v587_v10 }
  0x50   :  { %518 = vmatprep.subr.bf16.mxu0 %v737_v0  ;;  %538 = vmatprep.subr.bf16.mxu1 %v737_v0 }
  0x53   :  { %519 = vmatpush3.bf16.msra.mxu0 %v588_v11  ;;  %539 = vmatpush3.bf16.msra.mxu1 %v589_v12 }
  0x54   :  { %520 = vmatprep.subr.bf16.mxu0 %v737_v0  ;;  %540 = vmatprep.subr.bf16.mxu1 %v737_v0 }
  0x57   :  { %521 = vmatpush3.bf16.msra.mxu0 %v590_v13  ;;  %541 = vmatpush3.bf16.msra.mxu1 %v591_v14 }
  0x58   :  { %522 = vmatprep.subr.bf16.mxu0 %v737_v0  ;;  %542 = vmatprep.subr.bf16.mxu1 %v737_v0 }
  0x5b   :  { %523 = vmatpush3.bf16.msra.mxu0 %v592_v15  ;;  %543 = vmatpush3.bf16.msra.mxu1 %v593_v17 }
  0x5c   :  { %548 = vmatprep.subr.bf16.mxu0 %v737_v0 }
  0x5e   :  { %525 = vmatmul.mubr.bf16.vlgmr.msra.gmra.mxu0 %v98_v19  ;;  %545 = vmatmul.mubr.bf16.vlgmr.msra.gmra.mxu1 %v96_v20 }
  0x5f   :  { %549 = vmatpush3.bf16.msra.mxu0 %v594_v21  ;;  %564 = vmatprep.mubr.msk.bf16.mxu0 %vm738_vm0, %v737_v0 }
  0x60   :  { %550 = vmatprep.subr.bf16.mxu0 %v737_v0 }
  0x63   :  { %551 = vmatpush3.bf16.msra.mxu0 %v595_v22 }
  0x64   :  { %552 = vmatprep.subr.bf16.mxu0 %v737_v0 }
  0x67   :  { %553 = vmatpush3.bf16.msra.mxu0 %v596_v23 }
  0x68   :  { %554 = vmatprep.subr.bf16.mxu0 %v737_v0 }
  0x6b   :  { %555 = vmatpush3.bf16.msra.mxu0 %v597_v24 }
  0x6c   :  { %556 = vmatprep.subr.bf16.mxu0 %v737_v0 }
  0x6f   :  { %557 = vmatpush3.bf16.msra.mxu0 %v598_v25 }
  0x70   :  { %558 = vmatprep.subr.bf16.mxu0 %v737_v0 }
  0x73   :  { %559 = vmatpush3.bf16.msra.mxu0 %v599_v26 }
  0x74   :  { %560 = vmatprep.subr.bf16.mxu0 %v737_v0 }
  0x77   :  { %561 = vmatpush3.bf16.msra.mxu0 %v600_v27 }
  0x78   :  { %562 = vmatprep.subr.bf16.mxu0 %v737_v0 }
  0x7b   :  { %563 = vmatpush3.bf16.msra.mxu0 %v601_v28 }
 0x11e   :  { %v213_v29 = vpop.f32.mrf.mxu0  ;;  %v301_v30 = vpop.f32.mrf.mxu1 }
 0x11f   :  { %v302_v32 = vadd.f32 %v301_v30, %v213_v29 }
 0x120   :  { %v526_v33 = vpop.f32.mrf.mxu0  ;;  %v546_v35 = vpop.f32.mrf.mxu1 }
 0x121   :  { %v314_v36 = vmul.f32 %v470_v31, %v302_v32 }
 0x122   :  { %v216_v37 = vpop.f32.mrf.mxu0  ;;  %v304_v38 = vpop.f32.mrf.mxu1 }
 0x123   :  { %v322_v39 = vadd.f32 %v471_v34, %v314_v36 }
 0x124   :  { %v527_v40 = vpop.f32.mrf.mxu0  ;;  %v547_v41 = vpop.f32.mrf.mxu1 }
 0x125   :  { %v323_v42 = vmax.f32 %v322_v39, 0.0 }
 0x127   :  { %v324_v43 = vpack.c.bf16 %v323_v42, %v323_v42 }
 0x129   :  { %565 = vmatmul.mubr.bf16.vlgmr.msra.gmra.mxu0 %v324_v43 }
 0x1e9   :  { %v430_v45 = vpop.f32.mrf.mxu0 }
 0x1ea   :  { %v431_v46 = vadd.f32 %v472_v44, %v430_v45 }
 0x1eb   :  { %v566_v47 = vpop.f32.mrf.mxu0 }
 0x1ec   :  { %436 = vst [vmem:[#allocation11] sm:$0xff] %v431_v46 }
 0x1ed   :  { %v433_v48 = vpop.f32.mrf.mxu0 }
 0x1ee   :  { %713 = shalt.err (!%p710_p1)
}
 0x1ef   :  { %446 = dma.vmem_to_hbm [thread:$0]  %s444_s11, 128, %s859_s8, [#allocation4]   ;;  %v567_v49 = vpop.f32.mrf.mxu0 }
 0x1f0   :  { %728 = dma.done.wait [#allocation4], 128  }
 0x1f1   :  { %729 = vsyncadd [#allocation4], 4294967168 }
 0x1f2   :  { %450 = vsyncpa [#allocation3], 1 }
 0x1f3   :  { %451 = vsyncpa [#allocation6], 1 }
 0x1f4   :  { %452 = vsyncpa [#allocation9], 1 }
 0x1f5   :  { %453 = vsyncpa [#allocation4], 1 }

</bundles_post_ra>
